<compile_context>
chip_gen: v6e
topology: v6e:2x2x1
jax: 0.10.0
libtpu: 0.0.40
codegen_flags: <defaults>
</compile_context>

<pallas_src>
import functools

import jax
import jax.numpy as jnp
from jax.experimental import pallas as pl
from jax.experimental.pallas import tpu as pltpu


# ---------------------------------------------------------------------------
# Kernels
# ---------------------------------------------------------------------------
def _se_fused_kernel(x_ref, w1_ref, b1_ref, w2_ref, b2_ref, o_ref, *, inv_hw):
    """Whole sample(s) resident per grid step: squeeze + excite fused."""
    # Pass 1: global average pool (f32 accumulation).  Do NOT keep the full
    # block live across the FC chain -- x_ref is re-read below for the scale.
    pooled = jnp.sum(x_ref[...], axis=-1, dtype=jnp.float32) * inv_hw       # (Bt, C)

    # fc1 + ReLU
    h1 = jnp.dot(pooled, w1_ref[...], preferred_element_type=jnp.float32) + b1_ref[...]
    h1 = jnp.maximum(h1, 0.0)                                               # (Bt, hidden)

    # fc2 + Sigmoid
    s = jax.nn.sigmoid(
        jnp.dot(h1, w2_ref[...], preferred_element_type=jnp.float32) + b2_ref[...]
    )                                                                       # (Bt, C)

    # Pass 2: excite -- per-channel scale streamed straight from x_ref.
    o_ref[...] = (x_ref[...] * s[:, :, None].astype(x_ref.dtype)).astype(o_ref.dtype)


def _se_pool_fc_kernel(x_ref, w1_ref, b1_ref, w2_ref, b2_ref, s_ref, acc_ref, *, inv_hw):
    """Split path, kernel A: accumulate the pooled sum over H*W tiles; run the
    tiny FC chain at the last H*W step and emit s with shape (Bt, C, 1)."""
    hw_i = pl.program_id(1)

    @pl.when(hw_i == 0)
    def _():
        acc_ref[...] = jnp.zeros_like(acc_ref)

    acc_ref[...] += jnp.sum(x_ref[...], axis=-1, dtype=jnp.float32)

    @pl.when(hw_i == pl.num_programs(1) - 1)
    def _():
        pooled = acc_ref[...] * inv_hw                                      # (Bt, C)
        h1 = jnp.dot(pooled, w1_ref[...], preferred_element_type=jnp.float32) + b1_ref[...]
        h1 = jnp.maximum(h1, 0.0)
        s = jax.nn.sigmoid(
            jnp.dot(h1, w2_ref[...], preferred_element_type=jnp.float32) + b2_ref[...]
        )
        s_ref[...] = s[:, :, None].astype(s_ref.dtype)


def _se_scale_kernel(s_ref, x_ref, o_ref):
    """Split path, kernel B: apply the per-channel scale, tiled over (B, H*W)."""
    o_ref[...] = (x_ref[...] * s_ref[...].astype(x_ref.dtype)).astype(o_ref.dtype)


# ---------------------------------------------------------------------------
# Tiling helpers
# ---------------------------------------------------------------------------
def _vmem_capacity_bytes():
    try:
        cap = getattr(pltpu.get_tpu_info(), "vmem_capacity_bytes", None)
        if cap:
            return int(cap)
    except Exception:
        pass
    return 64 << 20          # conservative default (v7x per-TensorCore VMEM)


def _pick_bt(batch, per_item_bytes, target_bytes):
    """Largest batch tile (divisor of `batch`) whose block fits `target_bytes`,
    preferring an even, >=4-step grid (v7x megacore balance), then >=2 steps."""
    divisors = [d for d in range(1, batch + 1) if batch % d == 0]
    fits = [d for d in divisors if d * per_item_bytes <= target_bytes] or [1]
    for ok in (
        lambda d: (batch // d) >= 4 and (batch // d) % 2 == 0,
        lambda d: (batch // d) >= 2,
        lambda d: True,
    ):
        cand = [d for d in fits if ok(d)]
        if cand:
            return max(cand)
    return 1


def _pick_hw_tile(hw_pad, c, itemsize, target_bytes):
    """Largest multiple of 128 that divides hw_pad and keeps one (C, hw_t)
    slab inside target_bytes (split path only)."""
    n = hw_pad // 128
    for k in range(n, 0, -1):
        if n % k == 0 and k * 128 * c * itemsize <= target_bytes:
            return k * 128
    # TODO(synk): tile over channels too for extremely large C (the FC chain
    # would then need a cross-tile reduction); fall back to the minimum tile.
    return 128


# ---------------------------------------------------------------------------
# Wrapper
# ---------------------------------------------------------------------------
def se_block(x, w1, b1, w2, b2, *, force_split=False, split_hw_tile=None):
    """SEblock forward.  x: (B, C, H, W); w1: (C, hidden); b1: (1, hidden);
    w2: (hidden, C); b2: (1, C)."""
    B, C, H, W = x.shape
    HW = H * W
    hidden = w1.shape[1]
    itemsize = x.dtype.itemsize

    # Lane-dense slab: (B, C, HW_pad), HW_pad a multiple of 128.
    HW_pad = -(-HW // 128) * 128
    x2 = x.reshape(B, C, HW)
    if HW_pad != HW:
        x2 = jnp.pad(x2, ((0, 0), (0, 0), (0, HW_pad - HW)))
    inv_hw = 1.0 / float(HW)

    # --- exact VMEM budget: 2*in block + 2*out block + weights + slack -----
    vmem_cap = _vmem_capacity_bytes()
    weight_bytes = sum(int(a.size) * a.dtype.itemsize for a in (w1, b1, w2, b2))
    weight_vmem = max(weight_bytes, 64 << 10)        # (8,128)-tile padding floor
    slack = 2 << 20
    budget = max(24 << 20, min(vmem_cap - (16 << 20), 100 << 20))
    target_block_bytes = max(1 << 20, min(12 << 20, (budget - weight_vmem - slack) // 4))

    per_sample_bytes = C * HW_pad * itemsize
    dot_flops = 2 * B * (C * hidden + hidden * C)

    if per_sample_bytes <= target_block_bytes and not force_split:
        # ----------------- fused path: whole sample(s) per grid step -------
        bt = _pick_bt(B, per_sample_bytes, target_block_bytes)
        block_bytes = bt * per_sample_bytes
        vmem_limit = int(min(vmem_cap,
                             max(16 << 20, 4 * block_bytes + weight_vmem + slack + (2 << 20))))

        out = pl.pallas_call(
            functools.partial(_se_fused_kernel, inv_hw=inv_hw),
            out_shape=jax.ShapeDtypeStruct((B, C, HW_pad), x.dtype),
            grid_spec=pltpu.PrefetchScalarGridSpec(
                num_scalar_prefetch=0,
                grid=(B // bt,),
                in_specs=[
                    pl.BlockSpec((bt, C, HW_pad), lambda b: (b, 0, 0)),
                    pl.BlockSpec((C, hidden), lambda b: (0, 0)),
                    pl.BlockSpec((1, hidden), lambda b: (0, 0)),
                    pl.BlockSpec((hidden, C), lambda b: (0, 0)),
                    pl.BlockSpec((1, C), lambda b: (0, 0)),
                ],
                out_specs=pl.BlockSpec((bt, C, HW_pad), lambda b: (b, 0, 0)),
            ),
            compiler_params=pltpu.CompilerParams(
                dimension_semantics=("parallel",),
                vmem_limit_bytes=vmem_limit,
            ),
            cost_estimate=pl.CostEstimate(
                flops=2 * B * C * HW_pad + dot_flops,        # pool adds + scale muls
                transcendentals=B * C,                       # sigmoid
                bytes_accessed=2 * B * C * HW_pad * itemsize + weight_bytes,
            ),
        )(x2, w1, b1, w2, b2)
    else:
        # ----------------- split path: H*W tiled (huge per-sample) ---------
        hw_t = split_hw_tile or _pick_hw_tile(HW_pad, C, itemsize, target_block_bytes)
        assert hw_t % 128 == 0 and HW_pad % hw_t == 0
        bt = _pick_bt(B, C * hw_t * itemsize, target_block_bytes)
        block_bytes = bt * C * hw_t * itemsize
        vmem_limit = int(min(vmem_cap,
                             max(16 << 20, 4 * block_bytes + weight_vmem + slack + (2 << 20))))
        grid = (B // bt, HW_pad // hw_t)

        # Kernel A: pooled sum accumulated over H*W tiles, FC chain at the
        # last step -> per-channel scale s of shape (B, C, 1) in f32.
        s = pl.pallas_call(
            functools.partial(_se_pool_fc_kernel, inv_hw=inv_hw),
            out_shape=jax.ShapeDtypeStruct((B, C, 1), jnp.float32),
            grid_spec=pltpu.PrefetchScalarGridSpec(
                num_scalar_prefetch=0,
                grid=grid,
                in_specs=[
                    pl.BlockSpec((bt, C, hw_t), lambda b, h: (b, 0, h)),
                    pl.BlockSpec((C, hidden), lambda b, h: (0, 0)),
                    pl.BlockSpec((1, hidden), lambda b, h: (0, 0)),
                    pl.BlockSpec((hidden, C), lambda b, h: (0, 0)),
                    pl.BlockSpec((1, C), lambda b, h: (0, 0)),
                ],
                out_specs=pl.BlockSpec((bt, C, 1), lambda b, h: (b, 0, 0)),
                scratch_shapes=[pltpu.VMEM((bt, C), jnp.float32)],
            ),
            compiler_params=pltpu.CompilerParams(
                dimension_semantics=("parallel", "arbitrary"),
                vmem_limit_bytes=vmem_limit,
            ),
            cost_estimate=pl.CostEstimate(
                flops=B * C * HW_pad + dot_flops,
                transcendentals=B * C,
                bytes_accessed=B * C * HW_pad * itemsize + weight_bytes,
            ),
        )(x2, w1, b1, w2, b2)

        # Kernel B: apply per-channel scale, tiled over (batch, H*W).
        out = pl.pallas_call(
            _se_scale_kernel,
            out_shape=jax.ShapeDtypeStruct((B, C, HW_pad), x.dtype),
            grid_spec=pltpu.PrefetchScalarGridSpec(
                num_scalar_prefetch=0,
                grid=grid,
                in_specs=[
                    pl.BlockSpec((bt, C, 1), lambda b, h: (b, 0, 0)),
                    pl.BlockSpec((bt, C, hw_t), lambda b, h: (b, 0, h)),
                ],
                out_specs=pl.BlockSpec((bt, C, hw_t), lambda b, h: (b, 0, h)),
            ),
            compiler_params=pltpu.CompilerParams(
                dimension_semantics=("parallel", "parallel"),
                vmem_limit_bytes=vmem_limit,
            ),
            cost_estimate=pl.CostEstimate(
                flops=B * C * HW_pad,
                transcendentals=0,
                bytes_accessed=2 * B * C * HW_pad * itemsize,
            ),
        )(s, x2)

    if HW_pad != HW:
        out = out[:, :, :HW]
    return out.reshape(B, C, H, W)


def se_block_ref(x, w1, b1, w2, b2):
    pooled = jnp.mean(x, axis=(2, 3))                    # (B, C)
    h1 = jnp.maximum(pooled @ w1 + b1, 0.0)              # (B, hidden)
    s = jax.nn.sigmoid(h1 @ w2 + b2)                     # (B, C)
    return s[:, :, None, None] * x


# ---------------------------------------------------------------------------
# Self-test
# ---------------------------------------------------------------------------
if __name__ == "__main__":
    def make_inputs(key, B, C, H, W, r=0.25):
        hidden = max(1, int(C * r))
        kx, k1, kb1, k2, kb2 = jax.random.split(key, 5)
        x = jax.random.normal(kx, (B, C, H, W), dtype=jnp.float32)
        # PyTorch Linear weight is (out, in); the kernel consumes the
        # transposed (in, out) layout, built directly here.
        w1 = jax.random.normal(k1, (C, hidden), dtype=jnp.float32) * 0.2
        b1 = jax.random.normal(kb1, (1, hidden), dtype=jnp.float32) * 0.1
        w2 = jax.random.normal(k2, (hidden, C), dtype=jnp.float32) * 0.2
        b2 = jax.random.normal(kb2, (1, C), dtype=jnp.float32) * 0.1
        return x, w1, b1, w2, b2

    # 1) Fused path, lane-aligned H*W (16*16 = 256).
    x, w1, b1, w2, b2 = make_inputs(jax.random.PRNGKey(0), 2, 8, 16, 16)
    out = jax.block_until_ready(se_block(x, w1, b1, w2, b2))
    ref = se_block_ref(x, w1, b1, w2, b2)
    assert out.shape == x.shape
    assert jnp.allclose(out, ref, rtol=1e-5, atol=1e-5), "fused path mismatch"

    # 2) Fused path with H*W = 49 (not a multiple of 128) -> padded to 128.
    x, w1, b1, w2, b2 = make_inputs(jax.random.PRNGKey(1), 2, 8, 7, 7)
    out = jax.block_until_ready(se_block(x, w1, b1, w2, b2))
    ref = se_block_ref(x, w1, b1, w2, b2)
    assert jnp.allclose(out, ref, rtol=1e-5, atol=1e-5), "padded path mismatch"

    # 3) Split (H*W-tiled) path, forced at small shapes with 2 H*W tiles to
    #    validate the accumulate-then-scale fallback used for huge samples.
    x, w1, b1, w2, b2 = make_inputs(jax.random.PRNGKey(2), 2, 8, 16, 16)
    out = jax.block_until_ready(
        se_block(x, w1, b1, w2, b2, force_split=True, split_hw_tile=128))
    ref = se_block_ref(x, w1, b1, w2, b2)
    assert jnp.allclose(out, ref, rtol=1e-5, atol=1e-5), "split path mismatch"

    print("KERNEL_OK")
</pallas_src>

<mosaic_0001>
module attributes {stable_mosaic.version = 11 : i64} {
  func.func @_se_fused_kernel(%arg0: i32, %arg1: memref<1x8x256xf32, #tpu.memory_space<vmem>>, %arg2: memref<8x2xf32, #tpu.memory_space<vmem>>, %arg3: memref<1x2xf32, #tpu.memory_space<vmem>>, %arg4: memref<2x8xf32, #tpu.memory_space<vmem>>, %arg5: memref<1x8xf32, #tpu.memory_space<vmem>>, %arg6: memref<1x8x256xf32, #tpu.memory_space<vmem>>) attributes {dimension_semantics = [#tpu.dimension_semantics<parallel>], iteration_bounds = array<i64: 2>, scalar_prefetch = 0 : i64, scratch_operands = 0 : i64, tpu.core_type = #tpu.core_type<tc>, window_params = [{transform_indices = @transform_0, window_bounds = array<i64: 1, 8, 256>}, {pipeline_mode = #tpu.pipeline_mode<synchronous>, transform_indices = @transform_1, window_bounds = array<i64: 8, 2>}, {pipeline_mode = #tpu.pipeline_mode<synchronous>, transform_indices = @transform_2, window_bounds = array<i64: 1, 2>}, {pipeline_mode = #tpu.pipeline_mode<synchronous>, transform_indices = @transform_3, window_bounds = array<i64: 2, 8>}, {pipeline_mode = #tpu.pipeline_mode<synchronous>, transform_indices = @transform_4, window_bounds = array<i64: 1, 8>}, {transform_indices = @transform_5, window_bounds = array<i64: 1, 8, 256>}]} {
    %c0 = arith.constant 0 : index
    %c0_0 = arith.constant 0 : index
    %c0_1 = arith.constant 0 : index
    %0 = vector.load %arg1[%c0, %c0_0, %c0_1] : memref<1x8x256xf32, #tpu.memory_space<vmem>>, vector<1x8x256xf32>
    %cst = arith.constant dense<0.000000e+00> : vector<1x8xf32>
    %1 = vector.multi_reduction <add>, %0, %cst [2] : vector<1x8x256xf32> to vector<1x8xf32>
    %cst_2 = arith.constant 3.906250e-03 : f32
    %2 = vector.broadcast %cst_2 : f32 to vector<1x8xf32>
    %3 = arith.mulf %1, %2 : vector<1x8xf32>
    %c0_3 = arith.constant 0 : index
    %c0_4 = arith.constant 0 : index
    %4 = vector.load %arg2[%c0_3, %c0_4] : memref<8x2xf32, #tpu.memory_space<vmem>>, vector<8x2xf32>
    %cst_5 = arith.constant dense<0.000000e+00> : vector<1x2xf32>
    %5 = tpu.matmul %3, %4, %cst_5 {dimension_numbers = #tpu.dot_dimension_numbers<[1], [0], [0], [1], [0, 0, 1, 1], [], []>} : vector<1x8xf32>, vector<8x2xf32>, vector<1x2xf32> -> vector<1x2xf32>
    %c0_6 = arith.constant 0 : index
    %c0_7 = arith.constant 0 : index
    %6 = vector.load %arg3[%c0_6, %c0_7] : memref<1x2xf32, #tpu.memory_space<vmem>>, vector<1x2xf32>
    %7 = arith.addf %5, %6 : vector<1x2xf32>
    %cst_8 = arith.constant 0.000000e+00 : f32
    %8 = vector.broadcast %cst_8 : f32 to vector<1x2xf32>
    %9 = arith.maximumf %7, %8 : vector<1x2xf32>
    %c0_9 = arith.constant 0 : index
    %c0_10 = arith.constant 0 : index
    %10 = vector.load %arg4[%c0_9, %c0_10] : memref<2x8xf32, #tpu.memory_space<vmem>>, vector<2x8xf32>
    %cst_11 = arith.constant dense<0.000000e+00> : vector<1x8xf32>
    %11 = tpu.matmul %9, %10, %cst_11 {dimension_numbers = #tpu.dot_dimension_numbers<[1], [0], [0], [1], [0, 0, 1, 1], [], []>} : vector<1x2xf32>, vector<2x8xf32>, vector<1x8xf32> -> vector<1x8xf32>
    %c0_12 = arith.constant 0 : index
    %c0_13 = arith.constant 0 : index
    %12 = vector.load %arg5[%c0_12, %c0_13] : memref<1x8xf32, #tpu.memory_space<vmem>>, vector<1x8xf32>
    %13 = arith.addf %11, %12 : vector<1x8xf32>
    %14 = arith.negf %13 : vector<1x8xf32>
    %15 = math.exp %14 : vector<1x8xf32>
    %cst_14 = arith.constant 1.000000e+00 : f32
    %16 = vector.broadcast %cst_14 : f32 to vector<1x8xf32>
    %17 = arith.addf %16, %15 : vector<1x8xf32>
    %18 = arith.divf %16, %17 : vector<1x8xf32>
    %c0_15 = arith.constant 0 : index
    %c0_16 = arith.constant 0 : index
    %c0_17 = arith.constant 0 : index
    %19 = vector.load %arg1[%c0_15, %c0_16, %c0_17] : memref<1x8x256xf32, #tpu.memory_space<vmem>>, vector<1x8x256xf32>
    %20 = vector.shape_cast %18 : vector<1x8xf32> to vector<1x8x1xf32>
    %21 = vector.broadcast %20 : vector<1x8x1xf32> to vector<1x8x256xf32>
    %22 = arith.mulf %19, %21 : vector<1x8x256xf32>
    %c0_18 = arith.constant 0 : index
    %c0_19 = arith.constant 0 : index
    %c0_20 = arith.constant 0 : index
    %23 = vector.load %arg6[%c0_18, %c0_19, %c0_20] : memref<1x8x256xf32, #tpu.memory_space<vmem>>, vector<1x8x256xf32>
    tpu.vector_store %arg6[%c0_18, %c0_19, %c0_20], %22 {strides = array<i32>} : memref<1x8x256xf32, #tpu.memory_space<vmem>>, vector<1x8x256xf32>,
    return
  }
  func.func @transform_0(%arg0: i32) -> (i32, i32, i32) {
    %c0_i32 = arith.constant 0 : i32
    %c0_i32_0 = arith.constant 0 : i32
    %c0_i32_1 = arith.constant 0 : i32
    return %arg0, %c0_i32, %c0_i32_0 : i32, i32, i32
  }
  func.func @transform_1(%arg0: i32) -> (i32, i32) {
    %c0_i32 = arith.constant 0 : i32
    %c0_i32_0 = arith.constant 0 : i32
    %c0_i32_1 = arith.constant 0 : i32
    return %c0_i32, %c0_i32_0 : i32, i32
  }
  func.func @transform_2(%arg0: i32) -> (i32, i32) {
    %c0_i32 = arith.constant 0 : i32
    %c0_i32_0 = arith.constant 0 : i32
    %c0_i32_1 = arith.constant 0 : i32
    return %c0_i32, %c0_i32_0 : i32, i32
  }
  func.func @transform_3(%arg0: i32) -> (i32, i32) {
    %c0_i32 = arith.constant 0 : i32
    %c0_i32_0 = arith.constant 0 : i32
    %c0_i32_1 = arith.constant 0 : i32
    return %c0_i32, %c0_i32_0 : i32, i32
  }
  func.func @transform_4(%arg0: i32) -> (i32, i32) {
    %c0_i32 = arith.constant 0 : i32
    %c0_i32_0 = arith.constant 0 : i32
    %c0_i32_1 = arith.constant 0 : i32
    return %c0_i32, %c0_i32_0 : i32, i32
  }
  func.func @transform_5(%arg0: i32) -> (i32, i32, i32) {
    %c0_i32 = arith.constant 0 : i32
    %c0_i32_0 = arith.constant 0 : i32
    %c0_i32_1 = arith.constant 0 : i32
    return %arg0, %c0_i32, %c0_i32_0 : i32, i32, i32
  }
}

</mosaic_0001>

<bundles_post_ra>
// kernel: tpu_custom_call.1
= control target key start
LH: loop header
LB: loop body
LE: loop exit
PB: predicated region body
PF: predicated region fallthrough
CT: control target
= control target key end

     0   :  { %10 = vsyncpa [#allocation3], 0  ;;  %s889_s0 = inlined_call_operand.hbm [shape: f32[2,8,256], index: 0, kind: input, shape index: {}]   ;;  %s890_s1 = inlined_call_operand.vmem [shape: f32[8,2], index: 1, kind: input, shape index: {}]   ;;  %s891_s2 = inlined_call_operand.vmem [shape: f32[1,2], index: 2, kind: input, shape index: {}]   ;;  %s892_s3 = inlined_call_operand.vmem [shape: f32[2,8], index: 3, kind: input, shape index: {}]   ;;  %s893_s4 = inlined_call_operand.vmem [shape: f32[1,8], index: 4, kind: input, shape index: {}]   ;;  %s894_s5 = inlined_call_operand.hbm [shape: f32[2,8,256], index: 5, kind: output, shape index: {}]  }
   0x1   :  { %12 = vsyncpa [#allocation3 + $0x1], 0 }
   0x2   :  { %13 = vsyncpa [#allocation4], 0 }
   0x3   :  { %15 = vsyncpa [#allocation4 + $0x1], 0  ;;  %s726_s18 = smov 0   ;;  %s728_s19 = smov 0  }
   0x4   :  { %s730_s20 = smov 0   ;;  %s732_s21 = smov 0  }
   0x5 LB: > { %s747_s22 = sadd.s32 4294967295, %s690_s21   ;;  %s512_s23 = sadd.s32 4294967294, %s690_s21   ;;  %s690_s21 = sphi %s732_s21, %s911_s21   ;;  %s686_s20 = sphi %s730_s20, %s910_s20   ;;  %s682_s19 = sphi %s728_s19, %s909_s19   ;;  %s678_s18 = sphi %s726_s18, %s908_s18  }
   0x6   : > { %s751_s24 = sadd.s32 1, %s690_s21   ;;  %s28_s25 = sadd.s32 1, %s686_s20 }
   0x7   : > { %s25_s26 = ssub.s32 %s690_s21, %s751_s24  ;;  %p35_p0 = scmp.ne.s32.totalorder %s686_s20, %s682_s19 }
   0x8   : > { %p26_p1 = scmp.eq.s32.totalorder %s25_s26, 0  ;;  %p36_p2 = scmp.eq.s32.totalorder %s690_s21, 0 }
   0x9   : > { %p41_p3 = scmp.ne.s32.totalorder %s682_s19, %s678_s18  ;;  %p42_p4 = scmp.eq.s32.totalorder %s747_s22, 0 }
   0xa   : > { %s763_s27 = scalar_select %p26_p1, %s686_s20, %s28_s25  }
   0xb   : > { %p765_p5 = por %p36_p2, %p35_p0  ;;  %p769_p6 = por %p42_p4, %p41_p3 }
   0xc   : > { %p149_p7 = scmp.eq.s32.totalorder %s747_s22, 1  ;;  %p155_p8 = scmp.eq.s32.totalorder %s512_s23, 1 }
   0xd   : > { %s898_s29 = scalar_select %p769_p6, 1, 0 }
   0xe   : > { %p558_p10 = scmp.lt.s32.totalorder %s690_s21, 2  ;;  %p776_p11 = por %p149_p7, %p35_p0 }
   0xf   : > { %p780_p12 = por %p155_p8, %p41_p3  ;;  %s187_s7 = sand.u32 1, %s686_s20  }
  0x10   : > { %s899_s30 = scalar_select %p776_p11, 1, 0 }
  0x11   : > { %s900_s6 = scalar_select %p780_p12, 1, 0 }
  0x12   : > { %s530_s8 = sshll.u32 %s690_s21, 8  ;;  %s515_s9 = sshll.u32 %s187_s7, 4 }
  0x13   : > { %s789_s12 = scalar_lea.hbm %s889_s0, %s530_s8  ;;  %s191_s13 = scalar_lea.vmem [#allocation2], %s515_s9 }
  0x14   : > { %s199_s14 = sshll.u32 %s191_s13, 4  ;;  %p793_p13 = pnand %p558_p10, %p765_p5  ;;  %s797_s14 = int_to_ptr.vmem [resolvable:$true] %s199_s14 }
  0x15   : > { %s188_s16 = scalar_lea.sflag [#allocation3], %s187_s7  ;;  %s598_s17 = scalar_lea.hbm %s789_s12, 256 }
  0x16   : > { %p599_p2 = scmp.ne.s32.totalorder %s789_s12, %s598_s17  ;;  %p600_p3 = pneg %p793_p13 }
  0x17   : > { %s603_s26 = scalar_lea.hbm %s889_s0, 512  ;;  %p604_p5 = scmp.lt.s32.totalorder %s789_s12, %s889_s0 }
  0x18   : > { %p601_p4 = pnand %p600_p3, %p599_p2  ;;  %p605_p8 = scmp.lt.s32.totalorder %s603_s26, %s598_s17 }
  0x1a   : > { %p602_p7 = pneg %p601_p4  ;;  %p606_p10 = por %p605_p8, %p604_p5 }
  0x1c   : > { %p607_p9 = pnand %p606_p10, %p602_p7 }
  0x1e   : > { %610 = shalt.err (!%p607_p9)
}
  0x1f   : > { %s611_s7 = scalar_lea.vmem %s797_s14, 256  ;;  %s692_s9 = smov [#allocation2]  }
  0x20   : > { %p612_p0 = scmp.ne.s32.totalorder %s797_s14, %s611_s7  ;;  %s616_s10 = sshll.u32 %s692_s9, 4  ;;  %s617_s10 = int_to_ptr.vmem [resolvable:$false] %s616_s10 }
  0x21   : > { %s618_s11 = scalar_lea.vmem %s617_s10, 512  ;;  %p619_p4 = scmp.lt.s32.totalorder %s797_s14, %s617_s10 }
  0x22   : > { %p614_p1 = pnand %p612_p0, %p600_p3  ;;  %p620_p12 = scmp.lt.s32.totalorder %s618_s11, %s611_s7 }
  0x24   : > { %p615_p2 = pneg %p614_p1  ;;  %p621_p11 = por %p620_p12, %p619_p4 }
  0x26   : > { %p622_p6 = pnand %p621_p11, %p615_p2 }
  0x28   : > { %625 = shalt.err (!%p622_p6)
}
  0x29   : > { %553 = dma.hbm_to_vmem [thread:$0]  (!%p793_p13), %s789_s12, 256, %s797_s14, %s188_s16  }
  0x2a   : > { %p902_p9 = scmp.lt.s32.totalorder %s690_s21, 3  ;;  %p903_p7 = scmp.ge.s32.totalorder %s690_s21, 1 }
  0x2c   : > { %p205_p0 = pnand %p903_p7, %p902_p9 }
  0x2d   : > { %s824_s13 = sand.u32 (!%p205_p0), 1, %s682_s19   ;;  %p904_p6 = scmp.ne.s32.totalorder (!%p205_p0), %s898_s29, 0 }
  0x2e   : > { %208 = sbr.rel (%p205_p0) target bundleno = 753 (0x2f1), region = 40  ;;  %s519_s17 = sshll.u32 (!%p205_p0), %s824_s13, 4 }
  0x2f   : > { %s211_s23 = scalar_lea.sflag (!%p205_p0), [#allocation3], %s824_s13  ;;  %s214_s15 = scalar_lea.vmem (!%p205_p0), [#allocation2], %s519_s17 }
  0x33   : > { %669 = dma.done.wait (%p904_p6), %s211_s23, 256  }
  0x34   : > { %671 = vsyncadd (%p904_p6), %s211_s23, 4294967040  ;;  %v241_v0 = vld [vmem:[%s214_s15] sm:$0xff]  ;;  %v242_v1 = vld [vmem:[%s214_s15 + $0x8] sm:$0xff]  ;;  %v693_v3 = vmov 0.0   ;;  %vm694_vm0 = vmmov 0   ;;  %v250_v5 = vlaneseq  ;;  %vm256_vm1 = vcmask 64512  }
  0x35   : > { %v243_v2 = vadd.f32 %v242_v1, %v241_v0  ;;  %536 = vmatprep.subr.mxu0 %v693_v3  ;;  %v247_v4 = vld [vmem:[%s890_s1] sm:$0xff]  ;;  %541 = vmatprep.subr.mxu1 %v693_v3  ;;  %vm336_vm2 = vcmask 1041408   ;;  %vm332_vm3 = vcmask 15360   ;;  %s531_s7 = sshll.u32 %s747_s22, 8  ;;  %s240_s9 = scalar_lea.vmem [#allocation5], %s519_s17 }
  0x36   : > { %537 = vmatpush3.msra.mxu0 %v247_v4  ;;  %538 = vmatprep.mubr.msk.f32.mxu0 %vm694_vm0, %v693_v3  ;;  %v251_v6 = vand.u32 127, %v250_v5  ;;  %v253_v7 = vshrl.u32 %v250_v5, 7  ;;  %v330_v12 = vld [vmem:[%s892_s3] sm:$0x3]  ;;  %s442_s10 = sshll.u32 %s240_s9, 4  ;;  %s852_s15 = scalar_lea.hbm %s894_s5, %s531_s7  ;;  %s443_s10 = int_to_ptr.vmem [resolvable:$true] %s442_s10 }
  0x37   : > { %244 = vadd.xlane.f32.xlu0 %v243_v2  ;;  %543 = vmatprep.mubr.msk.f32.mxu1 %vm694_vm0, %v693_v3  ;;  %v248_v13 = vld [vmem:[%s891_s2] sm:$0x1]  ;;  %s428_s12 = scalar_lea.sflag [#allocation4], %s824_s13  ;;  %s626_s14 = scalar_lea.vmem %s443_s10, 256 }
  0x38   : > { %v254_v8 = vsub.s32 %v251_v6, %v253_v7  ;;  %542 = vmatpush3.msk.msra.mxu1 %vm336_vm2, %v330_v12  ;;  %v331_v18 = vld [vmem:[%s893_s4] sm:$0x1]  ;;  %v418_v25 = vsub.s32 0, %v253_v7  ;;  %p627_p11 = scmp.ne.s32.totalorder %s443_s10, %s626_s14  ;;  %p905_p12 = scmp.ne.s32.totalorder %s899_s30, 0 }
  0x39   : > { %s695_s22 = smov [#allocation5]  }
  0x3a   : > { %p628_p13 = pnand %p627_p11, %p905_p12  ;;  %s630_s17 = sshll.u32 %s695_s22, 4  ;;  %s631_s17 = int_to_ptr.vmem [resolvable:$false] %s630_s17 }
  0x3b   : > { %s632_s29 = scalar_lea.vmem %s631_s17, 512  ;;  %p633_p3 = scmp.lt.s32.totalorder %s443_s10, %s631_s17 }
  0x3c   : > { %p629_p1 = pneg %p628_p13  ;;  %p634_p5 = scmp.lt.s32.totalorder %s632_s29, %s626_s14 }
  0x3e   : > { %p635_p8 = por %p634_p5, %p633_p3 }
  0x40   : > { %p636_p10 = pnand %p635_p8, %p629_p1 }
  0xc0   : > { %v245_v9 = vpop.xlane.xlu0 %244 }
  0xc1   : > { %v246_v10 = vmul.f32 0.00390625, %v245_v9 }
  0xc3   : > { %v255_v11 = vrot.slane %v246_v10, %v254_v8 }
  0xc5   : > { %539 = vmatmul.mubr.msk.f32.vlgmr.msra.gmra.mxu0 %vm256_vm1, %v255_v11 }
 0x185   : > { %v325_v14 = vpop.f32.mrf.mxu0 }
 0x186   : > { %v326_v15 = vadd.f32 %v325_v14, %v248_v13 }
 0x187   : > { %v540_v16 = vpop.f32.mrf.mxu0 }
 0x188   : > { %v329_v17 = vmax.f32 %v326_v15, 0.0 }
 0x18a   : > { %544 = vmatmul.mubr.msk.f32.vlgmr.msra.gmra.mxu1 %vm332_vm3, %v329_v17 }
 0x24a   : > { %v406_v19 = vpop.f32.mrf.mxu1 }
 0x24b   : > { %v407_v20 = vadd.f32 %v406_v19, %v331_v18 }
 0x24c   : > { %v545_v21 = vpop.f32.mrf.mxu1 }
 0x24d   : > { %v524_v22 = vmul.f32 -1.442695, %v407_v20 }
 0x24f   : > { %594 = vpow2.f32 %v524_v22 }
 0x25c   : > { %v595_v23 = vpop.eup %594 }
 0x25d   : > { %v413_v24 = vadd.f32 1.0, %v595_v23 }
 0x25f   : > { %596 = vrcp.f32 %v413_v24 }
 0x26c   : > { %v597_v26 = vpop.eup %596 }
 0x26d   : > { %v419_v27 = vrot.slane %v597_v26, %v418_v25 }
 0x26f   : > { %421 = vbcast.lane.b32.xlu0 %v419_v27, 256 }
 0x2e1   : > { %v422_v28 = vpop.permute.xlu0 %421 }
 0x2e2   : > { %v423_v29 = vmul.f32 %v422_v28, %v241_v0  ;;  %v424_v30 = vmul.f32 %v422_v28, %v242_v1 }
 0x2e4   : > { %425 = vst [vmem:[%s240_s9] sm:$0xff] %v423_v29  ;;  %426 = vst [vmem:[%s240_s9 + $0x8] sm:$0xff] %v424_v30 }
 0x2e5   : > { %639 = shalt.err (!%p636_p10)
}
 0x2e6   : > { %s640_s16 = scalar_lea.hbm %s852_s15, 256  ;;  %s644_s26 = scalar_lea.hbm %s894_s5, 512 }
 0x2e7   : > { %p641_p2 = scmp.ne.s32.totalorder %s852_s15, %s640_s16  ;;  %p645_p7 = scmp.lt.s32.totalorder %s852_s15, %s894_s5 }
 0x2e8   : > { %p646_p0 = scmp.lt.s32.totalorder %s644_s26, %s640_s16 }
 0x2e9   : > { %p642_p4 = pnand %p641_p2, %p905_p12 }
 0x2ea   : > { %p647_p6 = por %p646_p0, %p645_p7 }
 0x2eb   : > { %p643_p9 = pneg %p642_p4 }
 0x2ed   : > { %p648_p11 = pnand %p647_p6, %p643_p9 }
 0x2ef   : > { %651 = shalt.err (!%p648_p11)
}
 0x2f0   : > { %548 = dma.vmem_to_hbm [thread:$0]  (%p905_p12), %s443_s10, 256, %s852_s15, %s428_s12  }
 0x2f1 PF: > { %s454_s7 = sand.u32 1, %s678_s18   ;;  %p906_p13 = scmp.ne.s32.totalorder %s900_s6, 0 }
 0x2f2   : > { %p907_p1 = scmp.ge.s32.totalorder %s690_s21, 2  ;;  %s455_s9 = scalar_lea.sflag [#allocation4], %s454_s7 }
 0x2f4   : > { %p555_p3 = pnand %p907_p1, %p906_p13 }
 0x2f6   : > { %p556_p5 = pneg %p555_p3 }
 0x2f8   : > { %673 = dma.done.wait (%p556_p5), %s455_s9, 256  }
 0x2f9   : > { %675 = vsyncadd (%p556_p5), %s455_s9, 4294967040  ;;  %p18_p8 = scmp.ge.s32.totalorder %s751_s24, 4   ;;  %s908_s18 = smov %s682_s19 }
 0x2fa   : > { %s909_s19 = smov %s686_s20  ;;  %s910_s20 = smov %s763_s27 }
 0x2fb   : > { %s911_s21 = smov %s751_s24  ;;  %20 = sbr.rel (!%p18_p8) target bundleno = 5 (0x5), region = 85 }
 0x300   :  { %460 = vsyncpa [#allocation3], 1 }
 0x301   :  { %462 = vsyncpa [#allocation3 + $0x1], 1 }
 0x302   :  { %463 = vsyncpa [#allocation4], 1 }
 0x303   :  { %465 = vsyncpa [#allocation4 + $0x1], 1 }

</bundles_post_ra>
